<compile_context>
chip_gen: v7x
topology: tpu7x:2x2x1
jax: 0.10.0
libtpu: 0.0.40
codegen_flags: <defaults>
</compile_context>

<pallas_src>
import jax
import jax.numpy as jnp
import numpy as np
from jax.experimental import pallas as pl
from jax.experimental.pallas import tpu as pltpu


# ----------------------------- Pallas kernel ---------------------------------
def attn_decoder_kernel(
    ids_ref,      # (B, 1)       i32   token ids
    emb_ref,      # (V, H)       bf16  embedding table (padding row pre-zeroed)
    h0_ref,       # (L, B, H)    f32   previous hidden state
    c0_ref,       # (L, B, H)    f32   previous cell state
    encf_ref,     # (B*M, H)     bf16  encoder outputs, lane-dense layout
    aW_ref,       # (2H, M)      bf16  attn weight        [W_emb ; W_h]
    cW_ref,       # (2H, H)      bf16  attn_combine       [W_emb ; W_attn]
    lW_ref,       # (L, 2H, 4H)  bf16  LSTM fused weights [W_ih  ; W_hh]
    oW_ref,       # (H, V)       bf16  output projection
    bias_ref,     # (L+3, Wb)    f32   packed biases: attn | comb | lstm[l] | out
    logp_ref,     # (B, V)       f32   log-probs
    hn_ref,       # (L, B, H)    f32   new hidden state (aliases h0)
    cn_ref,       # (L, B, H)    f32   new cell state   (aliases c0)
    attnw_ref,    # (B, M)       f32   attention weights
):
    V, H = emb_ref.shape
    L, B, _ = h0_ref.shape
    M = aW_ref.shape[1]
    bf16 = jnp.bfloat16

    def cat_dot(x_bf, y_bf, w, b):
        # [x | y] @ [w_top ; w_bot] + b without materializing the concat:
        # two independent back-to-back MXU pushes, f32 accumulation, bias added once.
        return (jnp.dot(x_bf, w[:H], preferred_element_type=jnp.float32)
                + jnp.dot(y_bf, w[H:], preferred_element_type=jnp.float32)
                + b)

    # ---- embedding gather: one-hot x table on the otherwise idle MXU (exact selection) --------
    ids = ids_ref[...]                                                     # (B, 1) i32
    onehot = jnp.where(
        jax.lax.broadcasted_iota(jnp.int32, (B, V), 1) == ids, 1.0, 0.0).astype(bf16)
    emb_bf = jnp.dot(onehot, emb_ref[...],
                     preferred_element_type=jnp.float32).astype(bf16)      # (B, H)

    # ---- attn_weights = softmax(attn([embedded | h0[0]])) --------------------------------------
    logits = cat_dot(emb_bf, h0_ref[0].astype(bf16), aW_ref[...],
                     bias_ref[0:1, :M])                                    # (B, M) f32
    logits = logits - jnp.max(logits, axis=-1, keepdims=True)
    e = jnp.exp(logits)
    attn_w = e * pl.reciprocal(jnp.sum(e, axis=-1, keepdims=True), approx=True)
    attnw_ref[...] = attn_w

    # ---- attn_applied = bmm(encoder_outputs, attn_weights) -------------------------------------
    # One MXU matmul: block-diagonal (B, B*M) attention weights x lane-dense (B*M, H) encoder
    # slab. Keeps M on lanes end-to-end: no in-kernel relayout, no cross-lane XLU reduce over
    # 16/128-filled vregs.
    lane = jax.lax.broadcasted_iota(jnp.int32, (B, B * M), 1)
    row = jax.lax.broadcasted_iota(jnp.int32, (B, B * M), 0)
    blockdiag = (lane >= row * M) & (lane < row * M + M)
    w_sel = jnp.where(blockdiag,
                      jnp.concatenate([attn_w] * B, axis=1), 0.0).astype(bf16)
    attn_applied = jnp.dot(w_sel, encf_ref[...],
                           preferred_element_type=jnp.float32)             # (B, H) f32

    # ---- attn_combine([embedded | attn_applied]) -----------------------------------------------
    x = cat_dot(emb_bf, attn_applied.astype(bf16), cW_ref[...],
                bias_ref[1:2, :H])                                         # (B, H) f32

    # ---- one LSTM step through L layers (seq_len == 1), static unroll --------------------------
    for l in range(L):
        gates = cat_dot(x.astype(bf16), h0_ref[l].astype(bf16), lW_ref[l],
                        bias_ref[2 + l:3 + l, :4 * H])                     # (B, 4H) f32
        sg = jax.nn.sigmoid(gates)          # one full-vreg EUP pass (i, f, o live here)
        th = jnp.tanh(gates)                # one full-vreg EUP pass (g lives here)
        i_g = sg[:, 0 * H:1 * H]
        f_g = sg[:, 1 * H:2 * H]
        g_g = th[:, 2 * H:3 * H]
        o_g = sg[:, 3 * H:4 * H]
        c_new = f_g * c0_ref[l] + i_g * g_g
        h_new = o_g * jnp.tanh(c_new)
        hn_ref[l] = h_new
        cn_ref[l] = c_new
        x = h_new                            # input to next layer

    # ---- out Linear + log_softmax (V = 128 -> lane-dense stores) -------------------------------
    out_logits = jnp.dot(x.astype(bf16), oW_ref[...],
                         preferred_element_type=jnp.float32) + bias_ref[2 + L:3 + L, :V]
    m = jnp.max(out_logits, axis=-1, keepdims=True)
    shifted = out_logits - m
    lse = jnp.log(jnp.sum(jnp.exp(shifted), axis=-1, keepdims=True))
    logp_ref[...] = shifted - lse


# --------------------------- one-time parameter prep ---------------------------
def prepare_params(params):
    """Hoisted out of the decode loop: transposes, per-layer stacking, fused LSTM bias,
    packed-bias operand, bf16 cast of all matmul weights + embedding table. Call ONCE."""
    wdt = jnp.bfloat16
    M = params["attn_W"].shape[0]
    H = params["comb_W"].shape[0]
    V = params["out_W"].shape[0]
    L = len(params["lstm_W_ih"])

    lstm_W = jnp.stack([jnp.concatenate([wi.T, wh.T], axis=0)            # (2H, 4H) per layer
                        for wi, wh in zip(params["lstm_W_ih"], params["lstm_W_hh"])])

    # packed biases: row 0 attn, row 1 comb, rows 2..L+1 fused LSTM, row L+2 out
    width = max(M, H, 4 * H, V)
    bias = jnp.zeros((L + 3, width), jnp.float32)
    bias = bias.at[0, :M].set(params["attn_b"])
    bias = bias.at[1, :H].set(params["comb_b"])
    for l in range(L):
        bias = bias.at[2 + l, :4 * H].set(params["lstm_b_ih"][l] + params["lstm_b_hh"][l])
    bias = bias.at[2 + L, :V].set(params["out_b"])

    return {
        "embedding": params["embedding"].astype(wdt),     # (V, H)
        "attn_W": params["attn_W"].T.astype(wdt),         # (2H, M)
        "comb_W": params["comb_W"].T.astype(wdt),         # (2H, H)
        "lstm_W": lstm_W.astype(wdt),                     # (L, 2H, 4H)
        "out_W": params["out_W"].T.astype(wdt),           # (H, V)
        "bias": bias,                                     # (L+3, max(M, H, 4H, V))
    }


def prepare_encoder_outputs(encoder_outputs_bhm):
    """PyTorch-layout (B, H, M) -> lane-dense (B*M, H) bf16 slab.
    Constant per sequence: call once, outside the per-token decode loop."""
    B, H, M = encoder_outputs_bhm.shape
    return jnp.swapaxes(encoder_outputs_bhm, 1, 2).reshape(B * M, H).astype(jnp.bfloat16)


# ------------------------------- hot-path wrapper ------------------------------
def attn_decoder_forward(input_ids, hidden, encoder_flat, prepped):
    """Mirrors AttnDecoderRNN.forward (eval mode, unidirectional).

    input_ids    : (B,) int32
    hidden       : (h0, c0), each (L, B, H)  -- donated, updated in place
    encoder_flat : (B*M, H) bf16 from prepare_encoder_outputs
    returns (log_probs (B,1,V), (h_n, c_n), attn_weights (B,M,1))
    """
    h0, c0 = hidden
    L, B, H = h0.shape
    M = prepped["attn_W"].shape[1]
    V = prepped["out_W"].shape[1]

    vmem = pl.BlockSpec(memory_space=pltpu.MemorySpace.VMEM)
    logp, h_n, c_n, attn_w = pl.pallas_call(
        attn_decoder_kernel,
        out_shape=(
            jax.ShapeDtypeStruct((B, V), jnp.float32),
            jax.ShapeDtypeStruct((L, B, H), jnp.float32),
            jax.ShapeDtypeStruct((L, B, H), jnp.float32),
            jax.ShapeDtypeStruct((B, M), jnp.float32),
        ),
        in_specs=[vmem] * 10,
        out_specs=(vmem, vmem, vmem, vmem),
        input_output_aliases={2: 1, 3: 2},      # h0 -> h_n, c0 -> c_n (in place with donation)
    )(
        input_ids.reshape(B, 1).astype(jnp.int32),
        prepped["embedding"], h0, c0, encoder_flat,
        prepped["attn_W"], prepped["comb_W"],
        prepped["lstm_W"], prepped["out_W"], prepped["bias"],
    )

    # match PyTorch output shapes exactly
    return logp.reshape(B, 1, V), (h_n, c_n), attn_w.reshape(B, M, 1)


# hidden state is donated so the h0->h_n / c0->c_n aliasing is realized without copies
attn_decoder_step = jax.jit(attn_decoder_forward, donate_argnums=(1,))


# --------------------------- pure-JAX f32 reference ----------------------------
def reference_forward(input_ids, hidden, encoder_outputs, params):
    h0, c0 = hidden
    L, B, H = h0.shape
    M = encoder_outputs.shape[-1]

    emb = jnp.take(params["embedding"], input_ids, axis=0)
    cat1 = jnp.concatenate([emb, h0[0]], axis=1)
    attn_w = jax.nn.softmax(cat1 @ params["attn_W"].T + params["attn_b"], axis=1)
    attn_applied = jnp.einsum("bhm,bm->bh", encoder_outputs, attn_w)
    cat2 = jnp.concatenate([emb, attn_applied], axis=1)
    x = cat2 @ params["comb_W"].T + params["comb_b"]

    h_n, c_n = [], []
    for l in range(L):
        gates = (x @ params["lstm_W_ih"][l].T + params["lstm_b_ih"][l]
                 + h0[l] @ params["lstm_W_hh"][l].T + params["lstm_b_hh"][l])
        i_g = jax.nn.sigmoid(gates[:, 0 * H:1 * H])
        f_g = jax.nn.sigmoid(gates[:, 1 * H:2 * H])
        g_g = jnp.tanh(gates[:, 2 * H:3 * H])
        o_g = jax.nn.sigmoid(gates[:, 3 * H:4 * H])
        c_new = f_g * c0[l] + i_g * g_g
        h_new = o_g * jnp.tanh(c_new)
        h_n.append(h_new); c_n.append(c_new)
        x = h_new

    logits = x @ params["out_W"].T + params["out_b"]
    logp = jax.nn.log_softmax(logits, axis=1)
    return (logp.reshape(B, 1, -1), (jnp.stack(h_n), jnp.stack(c_n)),
            attn_w.reshape(B, M, 1))


# --------------------------------- main -----------------------------------------
if __name__ == "__main__":
    # input_size must equal hidden_size (attn_combine output feeds the LSTM directly);
    # V=128 keeps the largest output (log-probs) lane-dense; B*M=128 fills the bmm lanes.
    B, H, M, V, L = 8, 32, 16, 128, 2   # batch, hidden, max_length, vocab, num_layers

    key = jax.random.PRNGKey(0)
    ks = jax.random.split(key, 16)

    def u(k, shape, s=0.1):
        return jax.random.uniform(k, shape, jnp.float32, -s, s)

    emb_table = u(ks[0], (V, H))
    emb_table = emb_table.at[3].set(0.0)     # padding_idx=3 row is zero

    params = {
        "embedding": emb_table,
        "attn_W": u(ks[1], (M, 2 * H)), "attn_b": u(ks[2], (M,)),
        "comb_W": u(ks[3], (H, 2 * H)), "comb_b": u(ks[4], (H,)),
        "lstm_W_ih": [u(ks[5], (4 * H, H)), u(ks[6], (4 * H, H))],
        "lstm_W_hh": [u(ks[7], (4 * H, H)), u(ks[8], (4 * H, H))],
        "lstm_b_ih": [u(ks[9], (4 * H,)), u(ks[10], (4 * H,))],
        "lstm_b_hh": [u(ks[11], (4 * H,)), u(ks[12], (4 * H,))],
        "out_W": u(ks[13], (V, H)), "out_b": u(ks[14], (V,)),
    }

    dk = jax.random.split(ks[15], 4)
    input_ids = jax.random.randint(dk[0], (B,), 0, V, dtype=jnp.int32)
    h0 = u(dk[1], (L, B, H), 0.5)
    c0 = u(dk[2], (L, B, H), 0.5)
    encoder_outputs = u(dk[3], (B, H, M), 0.5)   # PyTorch view(-1, H, M) layout

    prepped = prepare_params(params)                     # one-time weight re-layout
    enc_flat = prepare_encoder_outputs(encoder_outputs)  # once per sequence, outside decode loop

    # pure-JAX f32 reference FIRST: h0/c0 are donated to the jitted step below and must
    # not be reused afterwards.
    r_out, (r_hn, r_cn), r_aw = reference_forward(
        input_ids, (h0, c0), encoder_outputs, params)

    out, (h_n, c_n), attn_w = attn_decoder_step(
        input_ids, (h0, c0), enc_flat, prepped)
    jax.block_until_ready((out, h_n, c_n, attn_w))

    np.testing.assert_allclose(np.asarray(out), np.asarray(r_out), rtol=1e-2, atol=1e-2)
    np.testing.assert_allclose(np.asarray(h_n), np.asarray(r_hn), rtol=1e-2, atol=1e-2)
    np.testing.assert_allclose(np.asarray(c_n), np.asarray(r_cn), rtol=1e-2, atol=1e-2)
    np.testing.assert_allclose(np.asarray(attn_w), np.asarray(r_aw), rtol=1e-2, atol=1e-2)

    assert out.shape == (B, 1, V) and h_n.shape == (L, B, H) and attn_w.shape == (B, M, 1)
    print("KERNEL_OK")
</pallas_src>

<mosaic_0001>
module attributes {stable_mosaic.version = 11 : i64} {
  func.func @attn_decoder_kernel(%arg0: memref<8x1xi32, #tpu.memory_space<vmem>>, %arg1: memref<128x32xbf16, #tpu.memory_space<vmem>>, %arg2: memref<2x8x32xf32, #tpu.memory_space<vmem>>, %arg3: memref<2x8x32xf32, #tpu.memory_space<vmem>>, %arg4: memref<128x32xbf16, #tpu.memory_space<vmem>>, %arg5: memref<64x16xbf16, #tpu.memory_space<vmem>>, %arg6: memref<64x32xbf16, #tpu.memory_space<vmem>>, %arg7: memref<2x64x128xbf16, #tpu.memory_space<vmem>>, %arg8: memref<32x128xbf16, #tpu.memory_space<vmem>>, %arg9: memref<5x128xf32, #tpu.memory_space<vmem>>, %arg10: memref<8x128xf32, #tpu.memory_space<vmem>>, %arg11: memref<2x8x32xf32, #tpu.memory_space<vmem>>, %arg12: memref<2x8x32xf32, #tpu.memory_space<vmem>>, %arg13: memref<8x16xf32, #tpu.memory_space<vmem>>) attributes {dimension_semantics = [], scalar_prefetch = 0 : i64, scratch_operands = 0 : i64, tpu.core_type = #tpu.core_type<tc>} {
    %c0 = arith.constant 0 : index
    %c0_0 = arith.constant 0 : index
    %0 = vector.load %arg0[%c0, %c0_0] : memref<8x1xi32, #tpu.memory_space<vmem>>, vector<8x1xi32>
    %1 = tpu.iota {dimensions = array<i32: 1>} : vector<8x128xi32>
    %2 = vector.broadcast %0 : vector<8x1xi32> to vector<8x128xi32>
    %3 = arith.cmpi eq, %1, %2 : vector<8x128xi32>
    %cst = arith.constant 1.000000e+00 : f32
    %cst_1 = arith.constant 0.000000e+00 : f32
    %4 = vector.broadcast %cst : f32 to vector<8x128xf32>
    %5 = vector.broadcast %cst_1 : f32 to vector<8x128xf32>
    %6 = arith.select %3, %4, %5 : vector<8x128xi1>, vector<8x128xf32>
    %7 = arith.truncf %6 : vector<8x128xf32> to vector<8x128xbf16>
    %c0_2 = arith.constant 0 : index
    %c0_3 = arith.constant 0 : index
    %8 = vector.load %arg1[%c0_2, %c0_3] : memref<128x32xbf16, #tpu.memory_space<vmem>>, vector<128x32xbf16>
    %cst_4 = arith.constant dense<0.000000e+00> : vector<8x32xf32>
    %9 = tpu.matmul %7, %8, %cst_4 {dimension_numbers = #tpu.dot_dimension_numbers<[1], [0], [0], [1], [0, 0, 1, 1], [], []>} : vector<8x128xbf16>, vector<128x32xbf16>, vector<8x32xf32> -> vector<8x32xf32>
    %10 = arith.truncf %9 : vector<8x32xf32> to vector<8x32xbf16>
    %c0_5 = arith.constant 0 : index
    %c0_6 = arith.constant 0 : index
    %c0_7 = arith.constant 0 : index
    %11 = vector.load %arg2[%c0_5, %c0_6, %c0_7] : memref<2x8x32xf32, #tpu.memory_space<vmem>>, vector<1x8x32xf32>
    %12 = vector.shape_cast %11 : vector<1x8x32xf32> to vector<8x32xf32>
    %13 = arith.truncf %12 : vector<8x32xf32> to vector<8x32xbf16>
    %c0_8 = arith.constant 0 : index
    %c0_9 = arith.constant 0 : index
    %14 = vector.load %arg5[%c0_8, %c0_9] : memref<64x16xbf16, #tpu.memory_space<vmem>>, vector<64x16xbf16>
    %c0_10 = arith.constant 0 : index
    %c0_11 = arith.constant 0 : index
    %15 = vector.load %arg9[%c0_10, %c0_11] : memref<5x128xf32, #tpu.memory_space<vmem>>, vector<1x16xf32>
    %16 = vector.extract_strided_slice %14 {offsets = [0, 0], sizes = [32, 16], strides = [1, 1]} : vector<64x16xbf16> to vector<32x16xbf16>
    %cst_12 = arith.constant dense<0.000000e+00> : vector<8x16xf32>
    %17 = tpu.matmul %10, %16, %cst_12 {dimension_numbers = #tpu.dot_dimension_numbers<[1], [0], [0], [1], [0, 0, 1, 1], [], []>} : vector<8x32xbf16>, vector<32x16xbf16>, vector<8x16xf32> -> vector<8x16xf32>
    %18 = vector.extract_strided_slice %14 {offsets = [32, 0], sizes = [32, 16], strides = [1, 1]} : vector<64x16xbf16> to vector<32x16xbf16>
    %cst_13 = arith.constant dense<0.000000e+00> : vector<8x16xf32>
    %19 = tpu.matmul %13, %18, %cst_13 {dimension_numbers = #tpu.dot_dimension_numbers<[1], [0], [0], [1], [0, 0, 1, 1], [], []>} : vector<8x32xbf16>, vector<32x16xbf16>, vector<8x16xf32> -> vector<8x16xf32>
    %20 = arith.addf %17, %19 : vector<8x16xf32>
    %21 = vector.broadcast %15 : vector<1x16xf32> to vector<8x16xf32>
    %22 = arith.addf %20, %21 : vector<8x16xf32>
    %cst_14 = arith.constant dense<0xFF800000> : vector<8xf32>
    %23 = vector.multi_reduction <maximumf>, %22, %cst_14 [1] : vector<8x16xf32> to vector<8xf32>
    %24 = vector.shape_cast %23 : vector<8xf32> to vector<8x1xf32>
    %25 = vector.broadcast %24 : vector<8x1xf32> to vector<8x16xf32>
    %26 = arith.subf %22, %25 : vector<8x16xf32>
    %27 = math.exp %26 : vector<8x16xf32>
    %cst_15 = arith.constant dense<0.000000e+00> : vector<8xf32>
    %28 = vector.multi_reduction <add>, %27, %cst_15 [1] : vector<8x16xf32> to vector<8xf32>
    %29 = vector.shape_cast %28 : vector<8xf32> to vector<8x1xf32>
    %30 = tpu.reciprocal %29 {approx = true} : vector<8x1xf32> -> vector<8x1xf32>
    %31 = vector.broadcast %30 : vector<8x1xf32> to vector<8x16xf32>
    %32 = arith.mulf %27, %31 : vector<8x16xf32>
    %c0_16 = arith.constant 0 : index
    %c0_17 = arith.constant 0 : index
    %33 = vector.load %arg13[%c0_16, %c0_17] : memref<8x16xf32, #tpu.memory_space<vmem>>, vector<8x16xf32>
    tpu.vector_store %arg13[%c0_16, %c0_17], %32 {strides = array<i32>} : memref<8x16xf32, #tpu.memory_space<vmem>>, vector<8x16xf32>,
    %34 = tpu.iota {dimensions = array<i32: 1>} : vector<8x128xi32>
    %35 = tpu.iota {dimensions = array<i32: 0>} : vector<8x128xi32>
    %c16_i32 = arith.constant 16 : i32
    %36 = vector.broadcast %c16_i32 : i32 to vector<8x128xi32>
    %37 = arith.muli %35, %36 : vector<8x128xi32>
    %38 = arith.cmpi sge, %34, %37 : vector<8x128xi32>
    %c16_i32_18 = arith.constant 16 : i32
    %39 = vector.broadcast %c16_i32_18 : i32 to vector<8x128xi32>
    %40 = arith.muli %35, %39 : vector<8x128xi32>
    %c16_i32_19 = arith.constant 16 : i32
    %41 = vector.broadcast %c16_i32_19 : i32 to vector<8x128xi32>
    %42 = arith.addi %40, %41 : vector<8x128xi32>
    %43 = arith.cmpi slt, %34, %42 : vector<8x128xi32>
    %44 = arith.andi %38, %43 : vector<8x128xi1>
    %45 = tpu.concatenate %32, %32, %32, %32, %32, %32, %32, %32 in 1 : vector<8x16xf32>, vector<8x16xf32>, vector<8x16xf32>, vector<8x16xf32>, vector<8x16xf32>, vector<8x16xf32>, vector<8x16xf32>, vector<8x16xf32> -> vector<8x128xf32>
    %cst_20 = arith.constant 0.000000e+00 : f32
    %46 = vector.broadcast %cst_20 : f32 to vector<8x128xf32>
    %47 = arith.select %44, %45, %46 : vector<8x128xi1>, vector<8x128xf32>
    %48 = arith.truncf %47 : vector<8x128xf32> to vector<8x128xbf16>
    %c0_21 = arith.constant 0 : index
    %c0_22 = arith.constant 0 : index
    %49 = vector.load %arg4[%c0_21, %c0_22] : memref<128x32xbf16, #tpu.memory_space<vmem>>, vector<128x32xbf16>
    %cst_23 = arith.constant dense<0.000000e+00> : vector<8x32xf32>
    %50 = tpu.matmul %48, %49, %cst_23 {dimension_numbers = #tpu.dot_dimension_numbers<[1], [0], [0], [1], [0, 0, 1, 1], [], []>} : vector<8x128xbf16>, vector<128x32xbf16>, vector<8x32xf32> -> vector<8x32xf32>
    %51 = arith.truncf %50 : vector<8x32xf32> to vector<8x32xbf16>
    %c0_24 = arith.constant 0 : index
    %c0_25 = arith.constant 0 : index
    %52 = vector.load %arg6[%c0_24, %c0_25] : memref<64x32xbf16, #tpu.memory_space<vmem>>, vector<64x32xbf16>
    %c1 = arith.constant 1 : index
    %c0_26 = arith.constant 0 : index
    %53 = vector.load %arg9[%c1, %c0_26] : memref<5x128xf32, #tpu.memory_space<vmem>>, vector<1x32xf32>
    %54 = vector.extract_strided_slice %52 {offsets = [0, 0], sizes = [32, 32], strides = [1, 1]} : vector<64x32xbf16> to vector<32x32xbf16>
    %cst_27 = arith.constant dense<0.000000e+00> : vector<8x32xf32>
    %55 = tpu.matmul %10, %54, %cst_27 {dimension_numbers = #tpu.dot_dimension_numbers<[1], [0], [0], [1], [0, 0, 1, 1], [], []>} : vector<8x32xbf16>, vector<32x32xbf16>, vector<8x32xf32> -> vector<8x32xf32>
    %56 = vector.extract_strided_slice %52 {offsets = [32, 0], sizes = [32, 32], strides = [1, 1]} : vector<64x32xbf16> to vector<32x32xbf16>
    %cst_28 = arith.constant dense<0.000000e+00> : vector<8x32xf32>
    %57 = tpu.matmul %51, %56, %cst_28 {dimension_numbers = #tpu.dot_dimension_numbers<[1], [0], [0], [1], [0, 0, 1, 1], [], []>} : vector<8x32xbf16>, vector<32x32xbf16>, vector<8x32xf32> -> vector<8x32xf32>
    %58 = arith.addf %55, %57 : vector<8x32xf32>
    %59 = vector.broadcast %53 : vector<1x32xf32> to vector<8x32xf32>
    %60 = arith.addf %58, %59 : vector<8x32xf32>
    %61 = arith.truncf %60 : vector<8x32xf32> to vector<8x32xbf16>
    %c0_29 = arith.constant 0 : index
    %c0_30 = arith.constant 0 : index
    %c0_31 = arith.constant 0 : index
    %62 = vector.load %arg2[%c0_29, %c0_30, %c0_31] : memref<2x8x32xf32, #tpu.memory_space<vmem>>, vector<1x8x32xf32>
    %63 = vector.shape_cast %62 : vector<1x8x32xf32> to vector<8x32xf32>
    %64 = arith.truncf %63 : vector<8x32xf32> to vector<8x32xbf16>
    %c0_32 = arith.constant 0 : index
    %c0_33 = arith.constant 0 : index
    %c0_34 = arith.constant 0 : index
    %65 = vector.load %arg7[%c0_32, %c0_33, %c0_34] : memref<2x64x128xbf16, #tpu.memory_space<vmem>>, vector<1x64x128xbf16>
    %66 = vector.shape_cast %65 : vector<1x64x128xbf16> to vector<64x128xbf16>
    %c2 = arith.constant 2 : index
    %c0_35 = arith.constant 0 : index
    %67 = vector.load %arg9[%c2, %c0_35] : memref<5x128xf32, #tpu.memory_space<vmem>>, vector<1x128xf32>
    %68 = vector.extract_strided_slice %66 {offsets = [0, 0], sizes = [32, 128], strides = [1, 1]} : vector<64x128xbf16> to vector<32x128xbf16>
    %cst_36 = arith.constant dense<0.000000e+00> : vector<8x128xf32>
    %69 = tpu.matmul %61, %68, %cst_36 {dimension_numbers = #tpu.dot_dimension_numbers<[1], [0], [0], [1], [0, 0, 1, 1], [], []>} : vector<8x32xbf16>, vector<32x128xbf16>, vector<8x128xf32> -> vector<8x128xf32>
    %70 = vector.extract_strided_slice %66 {offsets = [32, 0], sizes = [32, 128], strides = [1, 1]} : vector<64x128xbf16> to vector<32x128xbf16>
    %cst_37 = arith.constant dense<0.000000e+00> : vector<8x128xf32>
    %71 = tpu.matmul %64, %70, %cst_37 {dimension_numbers = #tpu.dot_dimension_numbers<[1], [0], [0], [1], [0, 0, 1, 1], [], []>} : vector<8x32xbf16>, vector<32x128xbf16>, vector<8x128xf32> -> vector<8x128xf32>
    %72 = arith.addf %69, %71 : vector<8x128xf32>
    %73 = vector.broadcast %67 : vector<1x128xf32> to vector<8x128xf32>
    %74 = arith.addf %72, %73 : vector<8x128xf32>
    %75 = arith.negf %74 : vector<8x128xf32>
    %76 = math.exp %75 : vector<8x128xf32>
    %cst_38 = arith.constant 1.000000e+00 : f32
    %77 = vector.broadcast %cst_38 : f32 to vector<8x128xf32>
    %78 = arith.addf %77, %76 : vector<8x128xf32>
    %79 = arith.divf %77, %78 : vector<8x128xf32>
    %80 = math.tanh %74 : vector<8x128xf32>
    %81 = vector.extract_strided_slice %79 {offsets = [0, 0], sizes = [8, 32], strides = [1, 1]} : vector<8x128xf32> to vector<8x32xf32>
    %82 = vector.extract_strided_slice %79 {offsets = [0, 32], sizes = [8, 32], strides = [1, 1]} : vector<8x128xf32> to vector<8x32xf32>
    %83 = vector.extract_strided_slice %80 {offsets = [0, 64], sizes = [8, 32], strides = [1, 1]} : vector<8x128xf32> to vector<8x32xf32>
    %84 = vector.extract_strided_slice %79 {offsets = [0, 96], sizes = [8, 32], strides = [1, 1]} : vector<8x128xf32> to vector<8x32xf32>
    %c0_39 = arith.constant 0 : index
    %c0_40 = arith.constant 0 : index
    %c0_41 = arith.constant 0 : index
    %85 = vector.load %arg3[%c0_39, %c0_40, %c0_41] : memref<2x8x32xf32, #tpu.memory_space<vmem>>, vector<1x8x32xf32>
    %86 = vector.shape_cast %85 : vector<1x8x32xf32> to vector<8x32xf32>
    %87 = arith.mulf %82, %86 : vector<8x32xf32>
    %88 = arith.mulf %81, %83 : vector<8x32xf32>
    %89 = arith.addf %87, %88 : vector<8x32xf32>
    %90 = math.tanh %89 : vector<8x32xf32>
    %91 = arith.mulf %84, %90 : vector<8x32xf32>
    %c0_42 = arith.constant 0 : index
    %c0_43 = arith.constant 0 : index
    %c0_44 = arith.constant 0 : index
    %92 = vector.load %arg11[%c0_42, %c0_43, %c0_44] : memref<2x8x32xf32, #tpu.memory_space<vmem>>, vector<1x8x32xf32>
    %93 = vector.shape_cast %92 : vector<1x8x32xf32> to vector<8x32xf32>
    %94 = vector.shape_cast %91 : vector<8x32xf32> to vector<1x8x32xf32>
    tpu.vector_store %arg11[%c0_42, %c0_43, %c0_44], %94 {strides = array<i32>} : memref<2x8x32xf32, #tpu.memory_space<vmem>>, vector<1x8x32xf32>,
    %c0_45 = arith.constant 0 : index
    %c0_46 = arith.constant 0 : index
    %c0_47 = arith.constant 0 : index
    %95 = vector.load %arg12[%c0_45, %c0_46, %c0_47] : memref<2x8x32xf32, #tpu.memory_space<vmem>>, vector<1x8x32xf32>
    %96 = vector.shape_cast %95 : vector<1x8x32xf32> to vector<8x32xf32>
    %97 = vector.shape_cast %89 : vector<8x32xf32> to vector<1x8x32xf32>
    tpu.vector_store %arg12[%c0_45, %c0_46, %c0_47], %97 {strides = array<i32>} : memref<2x8x32xf32, #tpu.memory_space<vmem>>, vector<1x8x32xf32>,
    %98 = arith.truncf %91 : vector<8x32xf32> to vector<8x32xbf16>
    %c1_48 = arith.constant 1 : index
    %c0_49 = arith.constant 0 : index
    %c0_50 = arith.constant 0 : index
    %99 = vector.load %arg2[%c1_48, %c0_49, %c0_50] : memref<2x8x32xf32, #tpu.memory_space<vmem>>, vector<1x8x32xf32>
    %100 = vector.shape_cast %99 : vector<1x8x32xf32> to vector<8x32xf32>
    %101 = arith.truncf %100 : vector<8x32xf32> to vector<8x32xbf16>
    %c1_51 = arith.constant 1 : index
    %c0_52 = arith.constant 0 : index
    %c0_53 = arith.constant 0 : index
    %102 = vector.load %arg7[%c1_51, %c0_52, %c0_53] : memref<2x64x128xbf16, #tpu.memory_space<vmem>>, vector<1x64x128xbf16>
    %103 = vector.shape_cast %102 : vector<1x64x128xbf16> to vector<64x128xbf16>
    %c3 = arith.constant 3 : index
    %c0_54 = arith.constant 0 : index
    %104 = vector.load %arg9[%c3, %c0_54] : memref<5x128xf32, #tpu.memory_space<vmem>>, vector<1x128xf32>
    %105 = vector.extract_strided_slice %103 {offsets = [0, 0], sizes = [32, 128], strides = [1, 1]} : vector<64x128xbf16> to vector<32x128xbf16>
    %cst_55 = arith.constant dense<0.000000e+00> : vector<8x128xf32>
    %106 = tpu.matmul %98, %105, %cst_55 {dimension_numbers = #tpu.dot_dimension_numbers<[1], [0], [0], [1], [0, 0, 1, 1], [], []>} : vector<8x32xbf16>, vector<32x128xbf16>, vector<8x128xf32> -> vector<8x128xf32>
    %107 = vector.extract_strided_slice %103 {offsets = [32, 0], sizes = [32, 128], strides = [1, 1]} : vector<64x128xbf16> to vector<32x128xbf16>
    %cst_56 = arith.constant dense<0.000000e+00> : vector<8x128xf32>
    %108 = tpu.matmul %101, %107, %cst_56 {dimension_numbers = #tpu.dot_dimension_numbers<[1], [0], [0], [1], [0, 0, 1, 1], [], []>} : vector<8x32xbf16>, vector<32x128xbf16>, vector<8x128xf32> -> vector<8x128xf32>
    %109 = arith.addf %106, %108 : vector<8x128xf32>
    %110 = vector.broadcast %104 : vector<1x128xf32> to vector<8x128xf32>
    %111 = arith.addf %109, %110 : vector<8x128xf32>
    %112 = arith.negf %111 : vector<8x128xf32>
    %113 = math.exp %112 : vector<8x128xf32>
    %cst_57 = arith.constant 1.000000e+00 : f32
    %114 = vector.broadcast %cst_57 : f32 to vector<8x128xf32>
    %115 = arith.addf %114, %113 : vector<8x128xf32>
    %116 = arith.divf %114, %115 : vector<8x128xf32>
    %117 = math.tanh %111 : vector<8x128xf32>
    %118 = vector.extract_strided_slice %116 {offsets = [0, 0], sizes = [8, 32], strides = [1, 1]} : vector<8x128xf32> to vector<8x32xf32>
    %119 = vector.extract_strided_slice %116 {offsets = [0, 32], sizes = [8, 32], strides = [1, 1]} : vector<8x128xf32> to vector<8x32xf32>
    %120 = vector.extract_strided_slice %117 {offsets = [0, 64], sizes = [8, 32], strides = [1, 1]} : vector<8x128xf32> to vector<8x32xf32>
    %121 = vector.extract_strided_slice %116 {offsets = [0, 96], sizes = [8, 32], strides = [1, 1]} : vector<8x128xf32> to vector<8x32xf32>
    %c1_58 = arith.constant 1 : index
    %c0_59 = arith.constant 0 : index
    %c0_60 = arith.constant 0 : index
    %122 = vector.load %arg3[%c1_58, %c0_59, %c0_60] : memref<2x8x32xf32, #tpu.memory_space<vmem>>, vector<1x8x32xf32>
    %123 = vector.shape_cast %122 : vector<1x8x32xf32> to vector<8x32xf32>
    %124 = arith.mulf %119, %123 : vector<8x32xf32>
    %125 = arith.mulf %118, %120 : vector<8x32xf32>
    %126 = arith.addf %124, %125 : vector<8x32xf32>
    %127 = math.tanh %126 : vector<8x32xf32>
    %128 = arith.mulf %121, %127 : vector<8x32xf32>
    %c1_61 = arith.constant 1 : index
    %c0_62 = arith.constant 0 : index
    %c0_63 = arith.constant 0 : index
    %129 = vector.load %arg11[%c1_61, %c0_62, %c0_63] : memref<2x8x32xf32, #tpu.memory_space<vmem>>, vector<1x8x32xf32>
    %130 = vector.shape_cast %129 : vector<1x8x32xf32> to vector<8x32xf32>
    %131 = vector.shape_cast %128 : vector<8x32xf32> to vector<1x8x32xf32>
    tpu.vector_store %arg11[%c1_61, %c0_62, %c0_63], %131 {strides = array<i32>} : memref<2x8x32xf32, #tpu.memory_space<vmem>>, vector<1x8x32xf32>,
    %c1_64 = arith.constant 1 : index
    %c0_65 = arith.constant 0 : index
    %c0_66 = arith.constant 0 : index
    %132 = vector.load %arg12[%c1_64, %c0_65, %c0_66] : memref<2x8x32xf32, #tpu.memory_space<vmem>>, vector<1x8x32xf32>
    %133 = vector.shape_cast %132 : vector<1x8x32xf32> to vector<8x32xf32>
    %134 = vector.shape_cast %126 : vector<8x32xf32> to vector<1x8x32xf32>
    tpu.vector_store %arg12[%c1_64, %c0_65, %c0_66], %134 {strides = array<i32>} : memref<2x8x32xf32, #tpu.memory_space<vmem>>, vector<1x8x32xf32>,
    %135 = arith.truncf %128 : vector<8x32xf32> to vector<8x32xbf16>
    %c0_67 = arith.constant 0 : index
    %c0_68 = arith.constant 0 : index
    %136 = vector.load %arg8[%c0_67, %c0_68] : memref<32x128xbf16, #tpu.memory_space<vmem>>, vector<32x128xbf16>
    %cst_69 = arith.constant dense<0.000000e+00> : vector<8x128xf32>
    %137 = tpu.matmul %135, %136, %cst_69 {dimension_numbers = #tpu.dot_dimension_numbers<[1], [0], [0], [1], [0, 0, 1, 1], [], []>} : vector<8x32xbf16>, vector<32x128xbf16>, vector<8x128xf32> -> vector<8x128xf32>
    %c4 = arith.constant 4 : index
    %c0_70 = arith.constant 0 : index
    %138 = vector.load %arg9[%c4, %c0_70] : memref<5x128xf32, #tpu.memory_space<vmem>>, vector<1x128xf32>
    %139 = vector.broadcast %138 : vector<1x128xf32> to vector<8x128xf32>
    %140 = arith.addf %137, %139 : vector<8x128xf32>
    %cst_71 = arith.constant dense<0xFF800000> : vector<8xf32>
    %141 = vector.multi_reduction <maximumf>, %140, %cst_71 [1] : vector<8x128xf32> to vector<8xf32>
    %142 = vector.shape_cast %141 : vector<8xf32> to vector<8x1xf32>
    %143 = vector.broadcast %142 : vector<8x1xf32> to vector<8x128xf32>
    %144 = arith.subf %140, %143 : vector<8x128xf32>
    %145 = math.exp %144 : vector<8x128xf32>
    %cst_72 = arith.constant dense<0.000000e+00> : vector<8xf32>
    %146 = vector.multi_reduction <add>, %145, %cst_72 [1] : vector<8x128xf32> to vector<8xf32>
    %147 = vector.shape_cast %146 : vector<8xf32> to vector<8x1xf32>
    %148 = math.log %147 : vector<8x1xf32>
    %149 = vector.broadcast %148 : vector<8x1xf32> to vector<8x128xf32>
    %150 = arith.subf %144, %149 : vector<8x128xf32>
    %c0_73 = arith.constant 0 : index
    %c0_74 = arith.constant 0 : index
    %151 = vector.load %arg10[%c0_73, %c0_74] : memref<8x128xf32, #tpu.memory_space<vmem>>, vector<8x128xf32>
    tpu.vector_store %arg10[%c0_73, %c0_74], %150 {strides = array<i32>} : memref<8x128xf32, #tpu.memory_space<vmem>>, vector<8x128xf32>,
    return
  }
}

</mosaic_0001>

<bundles_post_ra>
// kernel: attn_decoder_forward.1
= control target key start
LH: loop header
LB: loop body
LE: loop exit
PB: predicated region body
PF: predicated region fallthrough
CT: control target
= control target key end

     0   :  { %19 = vsyncpa [#allocation3], 0  ;;  %v1364_v2 = vmov 0   ;;  %v1365_v3 = vmov 0.0   ;;  %vm1366_vm0 = vmmov 0   ;;  %vm179_vm1 = vcmask 261120   ;;  %s1725_s0 = inlined_call_operand.vmem [shape: s32[8,1], index: 0, kind: input, shape index: {}]   ;;  %s1726_s1 = inlined_call_operand.vmem [shape: bf16[128,32], index: 1, kind: input, shape index: {}]   ;;  %s1727_s2 = inlined_call_operand.vmem [shape: f32[2,8,32], index: 2, kind: input, shape index: {}, may-alias: {2,11}]   ;;  %s1728_s3 = inlined_call_operand.vmem [shape: f32[2,8,32], index: 3, kind: input, shape index: {}, may-alias: {3,12}]   ;;  %s1729_s4 = inlined_call_operand.vmem [shape: bf16[128,32], index: 4, kind: input, shape index: {}]   ;;  %s1730_s5 = inlined_call_operand.vmem [shape: bf16[64,16], index: 5, kind: input, shape index: {}]   ;;  %s1731_s6 = inlined_call_operand.vmem [shape: bf16[64,32], index: 6, kind: input, shape index: {}]   ;;  %s1732_s7 = inlined_call_operand.vmem [shape: bf16[2,64,128], index: 7, kind: input, shape index: {}]   ;;  %s1733_s8 = inlined_call_operand.vmem [shape: bf16[32,128], index: 8, kind: input, shape index: {}]   ;;  %s1734_s9 = inlined_call_operand.vmem [shape: f32[5,128], index: 9, kind: input, shape index: {}]   ;;  %s1735_s10 = inlined_call_operand.hbm [shape: f32[8,128], index: 10, kind: output, shape index: {0}]   ;;  %s1736_s11 = inlined_call_operand.vmem [shape: f32[2,8,32], index: 11, kind: output, shape index: {1}, may-alias: {2,11}]   ;;  %s1737_s12 = inlined_call_operand.vmem [shape: f32[2,8,32], index: 12, kind: output, shape index: {2}, may-alias: {3,12}]   ;;  %s1738_s13 = inlined_call_operand.hbm [shape: f32[8,16], index: 13, kind: output, shape index: {3}]  }
   0x1   :  { %v42_v0 = vld [vmem:[%s1725_s0] sm:$0xff]  ;;  %1257 = vset.pattern.permute.xlu0 %v1364_v2  ;;  %1132 = vmatprep.subr.bf16.mxu0 %v1365_v3  ;;  %v1259_v4 = vld [vmem:[%s1726_s1 + $0x8] sm:$0xff]   ;;  %v1260_v5 = vld [vmem:[%s1726_s1 + $0x10] sm:$0xff]  }
   0x2   :  { %v1258_v1 = vld [vmem:[%s1726_s1] sm:$0xff]   ;;  %46 = vperm.xlu0 %1257, %v42_v0   ;;  %1152 = vmatprep.subr.bf16.mxu1 %v1365_v3  ;;  %v1261_v6 = vld [vmem:[%s1726_s1 + $0x18] sm:$0xff]   ;;  %v1266_v7 = vld [vmem:[%s1730_s5 + $0x10] sm:$0xff]  }
   0x3   :  { %1133 = vmatpush3.bf16.msra.mxu0 %v1258_v1  ;;  %1148 = vmatprep.mubr.msk.bf16.mxu0 %vm1366_vm0, %v1365_v3  ;;  %v1267_v8 = vld [vmem:[%s1730_s5 + $0x18] sm:$0xff]   ;;  %v156_v9 = vld [vmem:[%s1727_s2] sm:$0xff]  ;;  %v1263_v13 = vld [vmem:[%s1726_s1 + $0x28] sm:$0xff]  }
   0x4   :  { %1134 = vmatprep.subr.bf16.mxu0 %v1365_v3  ;;  %1156 = vmatprep.mubr.msk.bf16.mxu1 %vm1366_vm0, %v1365_v3  ;;  %v1262_v10 = vld [vmem:[%s1726_s1 + $0x20] sm:$0xff]   ;;  %v1487_v12 = vpack.c.bf16 %v156_v9, %v156_v9  ;;  %v1269_v14 = vld [vmem:[%s1730_s5 + $0x8] sm:$0xff]   ;;  %v1264_v15 = vld [vmem:[%s1726_s1 + $0x30] sm:$0xff]  }
   0x5   :  { %1153 = vmatpush3.bf16.msra.mxu1 %v1266_v7  ;;  %v1268_v11 = vld [vmem:[%s1730_s5] sm:$0xff]   ;;  %v1265_v16 = vld [vmem:[%s1726_s1 + $0x38] sm:$0xff]  }
   0x6   :  { %1154 = vmatprep.subr.bf16.mxu1 %v1365_v3 }
   0x7   :  { %1135 = vmatpush3.bf16.msra.mxu0 %v1259_v4 }
   0x8   :  { %1136 = vmatprep.subr.bf16.mxu0 %v1365_v3 }
   0x9   :  { %1155 = vmatpush3.bf16.msra.mxu1 %v1267_v8 }
   0xa   :  { %1160 = vmatprep.subr.bf16.mxu1 %v1365_v3 }
   0xb   :  { %1137 = vmatpush3.bf16.msra.mxu0 %v1260_v5 }
   0xc   :  { %1138 = vmatprep.subr.bf16.mxu0 %v1365_v3  ;;  %1157 = vmatmul.mubr.msk.bf16.vlgmr.msra.gmra.mrb[0].mxu1 %vm179_vm1, %v1487_v12 }
   0xd   :  { %1161 = vmatpush3.bf16.msra.mxu1 %v1268_v11  ;;  %1164 = vmatprep.mubr.msk.bf16.mxu1 %vm1366_vm0, %v1365_v3 }
   0xe   :  { %1162 = vmatprep.subr.bf16.mxu1 %v1365_v3 }
   0xf   :  { %1139 = vmatpush3.bf16.msra.mxu0 %v1261_v6 }
  0x10   :  { %1140 = vmatprep.subr.bf16.mxu0 %v1365_v3 }
  0x11   :  { %1163 = vmatpush3.bf16.msra.mxu1 %v1269_v14 }
  0x12   :  { %1168 = vmatprep.subr.bf16.mxu1 %v1365_v3 }
  0x13   :  { %1141 = vmatpush3.bf16.msra.mxu0 %v1262_v10 }
  0x14   :  { %1142 = vmatprep.subr.bf16.mxu0 %v1365_v3 }
  0x17   :  { %1143 = vmatpush3.bf16.msra.mxu0 %v1263_v13 }
  0x18   :  { %1144 = vmatprep.subr.bf16.mxu0 %v1365_v3 }
  0x1b   :  { %1145 = vmatpush3.bf16.msra.mxu0 %v1264_v15 }
  0x1c   :  { %1146 = vmatprep.subr.bf16.mxu0 %v1365_v3 }
  0x1d   :  { %20 = vsyncpa [#allocation5], 0  ;;  %v43_v17 = vlaneseq  ;;  %v1367_v20 = vmov 1.0|1.0   ;;  %v1036_v31 = vld [vmem:[%s1734_s9] ss:$0 sm:$0xff] }
  0x1e   :  { %vm283_vm4 = vcmask 130048   ;;  %v1270_v43 = vld [vmem:[%s1729_s4] sm:$0xff]   ;;  %v1271_v44 = vld [vmem:[%s1729_s4 + $0x8] sm:$0xff]   ;;  %v1272_v45 = vld [vmem:[%s1729_s4 + $0x10] sm:$0xff]   ;;  %s1368_s29 = smov 96   ;;  %s1369_s30 = smov 16  }
  0x1f   :  { %1147 = vmatpush3.bf16.msra.mxu0 %v1265_v16  ;;  %v1514_v18 = vand.u32 127, %v43_v17  ;;  %v1273_v47 = vld [vmem:[%s1729_s4 + $0x18] sm:$0xff]   ;;  %v1274_v48 = vld [vmem:[%s1729_s4 + $0x20] sm:$0xff]   ;;  %v1275_v50 = vld [vmem:[%s1729_s4 + $0x28] sm:$0xff]   ;;  %s1370_s5 = smov 32   ;;  %s1371_s16 = smov 48  }
  0x20   :  { %1188 = vmatprep.subr.bf16.mxu0 %v1365_v3  ;;  %v1276_v52 = vld [vmem:[%s1729_s4 + $0x30] sm:$0xff]   ;;  %v1277_v53 = vld [vmem:[%s1729_s4 + $0x38] sm:$0xff]   ;;  %s1372_s19 = smov 64   ;;  %s1373_s4 = smov 80   ;;  %v297_v57 = vshrl.u32 %v43_v17, 7  ;;  %vm327_vm5 = vcmask 392192  }
  0x21   :  { %v1278_v54 = vld [vmem:[%s1731_s6 + $0x10] sm:$0xff]   ;;  %v1279_v55 = vld [vmem:[%s1731_s6 + $0x18] sm:$0xff]   ;;  %s1374_s22 = smov 112   ;;  %vm329_vm6 = vcmask 523264   ;;  %vm331_vm7 = vcmask 654336   ;;  %vm333_vm10 = vcmask 785408  }
  0x22   :  { %v298_v59 = vmul.u32 16, %v297_v57  ;;  %vm335_vm11 = vcmask 916480   ;;  %v1280_v13 = vld [vmem:[%s1731_s6] sm:$0xff]   ;;  %v1286_v57 = vld [vmem:[%s1732_s7 + $0x30] sm:$0xff]  }
  0x24   :  { %v300_v61 = vadd.s32 16, %v298_v59  ;;  %vm299_vm8 = vcmp.ge.s32.totalorder %v1514_v18, %v298_v59  ;;  %v1288_v59 = vld [vmem:[%s1732_s7 + $0x38] sm:$0xff]  }
  0x26   :  { %vm301_vm9 = vcmp.lt.s32.totalorder %v1514_v18, %v300_v61  ;;  %v1063_v61 = vld [vmem:[%s1727_s2 + $0x8] sm:$0xff] }
  0x27   :  { %vm302_vm12 = vmand %vm299_vm8, %vm301_vm9 }
  0x28   :  { %vm1045_vm13 = vmpackc.low %vm302_vm12, %vm302_vm12 }
  0x81   :  { %v47_v19 = vpop.permute.xlu0 %46 }
  0x82   :  { %vm48_vm2 = vcmp.eq.s32.totalorder %v1514_v18, %v47_v19  ;;  %v1281_v18 = vld [vmem:[%s1731_s6 + $0x8] sm:$0xff]   ;;  %v1282_v19 = vld [vmem:[%s1732_s7 + $0x10] sm:$0xff]  }
  0x83   :  { %vm1028_vm3 = vmpackc.low %vm48_vm2, %vm48_vm2 }
  0x84   :  { %1149 = vmatmul.mubr.msk.bf16.vlgmr.msra.gmra.mrb[0].mxu0 %vm1028_vm3, %v1367_v20  ;;  %v1283_v20 = vld [vmem:[%s1732_s7] sm:$0xff]  }
  0x85   :  { %1192 = vmatprep.mubr.msk.bf16.mxu0 %vm1366_vm0, %v1365_v3  ;;  %1189 = vmatpush3.bf16.msra.mxu0 %v1278_v54 }
  0x86   :  { %1190 = vmatprep.subr.bf16.mxu0 %v1365_v3 }
  0x89   :  { %1191 = vmatpush3.bf16.msra.mxu0 %v1279_v55 }
  0x8a   :  { %1196 = vmatprep.subr.bf16.mxu0 %v1365_v3 }
  0xdf   :  { %v217_v21 = vpop.f32.mrb[0].mxu1 }
  0xe0   :  { %v1158_v22 = vpop.f32.mrb[1].mxu1 }
  0xe1   :  { %v220_v23 = vpop.f32.mrb[2].mxu1  ;;  %v1285_v22 = vld [vmem:[%s1732_s7 + $0x8] sm:$0xff]  }
  0xe2   :  { %v1159_v24 = vpop.f32.mrb[3].mxu1 }
 0x157   :  { %v149_v25 = vpop.f32.mrb[0].mxu0 }
 0x158   :  { %v1519_v26 = vpack.c.bf16 %v149_v25, %v149_v25  ;;  %v1150_v27 = vpop.f32.mrb[1].mxu0 }
 0x159   :  { %v152_v28 = vpop.f32.mrb[2].mxu0  ;;  %v1054_v27 = vld [vmem:[%s1734_s9 + $0x1] ss:$0 sm:$0xff] }
 0x15a   :  { %v1151_v29 = vpop.f32.mrb[3].mxu0  ;;  %1165 = vmatmul.mubr.msk.bf16.vlgmr.msra.gmra.mrb[4].mxu1 %vm179_vm1, %v1519_v26 }
 0x15b   :  { %1184 = vmatprep.mubr.msk.bf16.mxu1 %vm1366_vm0, %v1365_v3  ;;  %1169 = vmatpush3.bf16.msra.mxu1 %v1270_v43 }
 0x15c   :  { %1170 = vmatprep.subr.bf16.mxu1 %v1365_v3 }
 0x15f   :  { %1171 = vmatpush3.bf16.msra.mxu1 %v1271_v44 }
 0x160   :  { %1172 = vmatprep.subr.bf16.mxu1 %v1365_v3 }
 0x163   :  { %1173 = vmatpush3.bf16.msra.mxu1 %v1272_v45 }
 0x164   :  { %1174 = vmatprep.subr.bf16.mxu1 %v1365_v3 }
 0x167   :  { %1175 = vmatpush3.bf16.msra.mxu1 %v1273_v47 }
 0x168   :  { %1176 = vmatprep.subr.bf16.mxu1 %v1365_v3 }
 0x16b   :  { %1177 = vmatpush3.bf16.msra.mxu1 %v1274_v48 }
 0x16c   :  { %1178 = vmatprep.subr.bf16.mxu1 %v1365_v3 }
 0x16f   :  { %1179 = vmatpush3.bf16.msra.mxu1 %v1275_v50 }
 0x170   :  { %1180 = vmatprep.subr.bf16.mxu1 %v1365_v3 }
 0x173   :  { %1181 = vmatpush3.bf16.msra.mxu1 %v1276_v52 }
 0x174   :  { %1182 = vmatprep.subr.bf16.mxu1 %v1365_v3 }
 0x177   :  { %1183 = vmatpush3.bf16.msra.mxu1 %v1277_v53 }
 0x178   :  { %1212 = vmatprep.subr.bf16.mxu1 %v1365_v3 }
 0x22d   :  { %v272_v30 = vpop.f32.mrb[4].mxu1 }
 0x22e   :  { %v273_v32 = vadd.f32 %v272_v30, %v217_v21  ;;  %v1166_v33 = vpop.f32.mrb[5].mxu1  ;;  %v1284_v21 = vld [vmem:[%s1732_s7 + $0x18] sm:$0xff]  }
 0x22f   :  { %v275_v34 = vpop.f32.mrb[6].mxu1 }
 0x230   :  { %v1167_v35 = vpop.f32.mrb[7].mxu1  ;;  %v282_v36 = vadd.f32 %v1036_v31, %v273_v32 }
 0x232   :  { %v284_v37 = vsel %vm283_vm4, %v282_v36, -inf }
 0x233   :  { %285 = vmax.xlane.f32.xlu0 %v284_v37 }
 0x2c0   :  { %v286_v38 = vpop.xlane.xlu0 %285 }
 0x2c1   :  { %v287_v39 = vsub.f32 %v282_v36, %v286_v38  ;;  %v1061_v38 = vld [vmem:[%s1734_s9 + $0x2] ss:$0 sm:$0xff] }
 0x2c3   :  { %v288_v40 = vmul.f32 1.442695, %v287_v39 }
 0x2c5   :  { %1292 = vpow2.f32 %v288_v40 }
 0x2cf   :  { %v1293_v41 = vpop.eup %1292 }
 0x2d0   :  { %v290_v42 = vsel %vm283_vm4, %v1293_v41, 0.0 }
 0x2d1   :  { %291 = vadd.xlane.f32.xlu1 %v290_v42 }
 0x35e   :  { %v292_v46 = vpop.xlane.xlu1 %291 }
 0x35f   :  { %1294 = vrcp.f32 %v292_v46  ;;  %v699_v46 = vld [vmem:[%s1728_s3] sm:$0xff] }
 0x369   :  { %v1295_v49 = vpop.eup %1294 }
 0x36a   :  { %v294_v51 = vmul.f32 %v1295_v49, %v1293_v41 }
 0x36c   :  { %295 = vst.msk [vmem:[#allocation4] sm:$0xff] %vm283_vm4, %v294_v51  ;;  %319 = vrot.lane.b32.xlu0 %v294_v51, %s1368_s29  ;;  %304 = vrot.lane.b32.xlu1 %v294_v51, %s1369_s30 }
 0x370   :  { %307 = vrot.lane.b32.xlu1 %v294_v51, %s1370_s5 }
 0x374   :  { %310 = vrot.lane.b32.xlu1 %v294_v51, %s1371_s16 }
 0x378   :  { %313 = vrot.lane.b32.xlu1 %v294_v51, %s1372_s19 }
 0x37c   :  { %316 = vrot.lane.b32.xlu1 %v294_v51, %s1373_s4 }
 0x380   :  { %322 = vrot.lane.b32.xlu1 %v294_v51, %s1374_s22 }
 0x3de   :  { %v305_v56 = vpop.permute.xlu1 %304  ;;  %v320_v6 = vpop.permute.xlu0 %319 }
 0x3df   :  { %v325_v63 = vsel %vm283_vm4, %v294_v51, %v305_v56 }
 0x3e2   :  { %v308_v58 = vpop.permute.xlu1 %307 }
 0x3e3   :  { %v326_v0 = vsel %vm179_vm1, %v325_v63, %v308_v58  ;;  %v1287_v58 = vld [vmem:[%s1732_s7 + $0x20] sm:$0xff]  }
 0x3e6   :  { %v311_v60 = vpop.permute.xlu1 %310 }
 0x3e7   :  { %v328_v1 = vsel %vm327_vm5, %v326_v0, %v311_v60  ;;  %v1289_v60 = vld [vmem:[%s1732_s7 + $0x28] sm:$0xff]  }
 0x3ea   :  { %v314_v62 = vpop.permute.xlu1 %313 }
 0x3eb   :  { %v330_v2 = vsel %vm329_vm6, %v328_v1, %v314_v62  ;;  %v734_v62 = vpack.c.bf16 %v1063_v61, %v1063_v61 }
 0x3ee   :  { %v317_v4 = vpop.permute.xlu1 %316 }
 0x3ef   :  { %v332_v5 = vsel %vm331_vm7, %v330_v2, %v317_v4  ;;  %v1080_v4 = vld [vmem:[%s1728_s3 + $0x8] sm:$0xff] }
 0x3f0   :  { %v334_v7 = vsel %vm333_vm10, %v332_v5, %v320_v6 }
 0x3f2   :  { %v323_v8 = vpop.permute.xlu1 %322 }
 0x3f3   :  { %v336_v9 = vsel %vm335_vm11, %v334_v7, %v323_v8 }
 0x3f4   :  { %v1046_v10 = vpack.c.bf16 %v336_v9, %v336_v9 }
 0x3f6   :  { %1185 = vmatmul.mubr.msk.bf16.vlgmr.msra.gmra.mrb[8].mxu1 %vm1045_vm13, %v1046_v10  ;;  %v1078_v10 = vld [vmem:[%s1734_s9 + $0x3] ss:$0 sm:$0xff] }
 0x3f7   :  { %1216 = vmatprep.mubr.msk.bf16.mxu1 %vm1366_vm0, %v1365_v3  ;;  %1213 = vmatpush3.bf16.msra.mxu1 %v1283_v20 }
 0x3f8   :  { %1214 = vmatprep.subr.bf16.mxu1 %v1365_v3 }
 0x3fb   :  { %1215 = vmatpush3.bf16.msra.mxu1 %v1285_v22 }
 0x3fc   :  { %1228 = vmatprep.subr.bf16.mxu1 %v1365_v3 }
 0x4c9   :  { %v437_v11 = vpop.f32.mrb[8].mxu1 }
 0x4ca   :  { %v443_v14 = vpack.c.bf16 %v437_v11, %v437_v11  ;;  %v1186_v15 = vpop.f32.mrb[9].mxu1 }
 0x4cb   :  { %v440_v16 = vpop.f32.mrb[10].mxu1 }
 0x4cc   :  { %v1187_v17 = vpop.f32.mrb[11].mxu1  ;;  %1193 = vmatmul.mubr.msk.bf16.vlgmr.msra.gmra.mrb[4].mxu0 %vm179_vm1, %v443_v14 }
 0x4cd   :  { %1197 = vmatpush3.bf16.msra.mxu0 %v1280_v13  ;;  %1200 = vmatprep.mubr.msk.bf16.mxu0 %vm1366_vm0, %v1365_v3 }
 0x4ce   :  { %1198 = vmatprep.subr.bf16.mxu0 %v1365_v3 }
 0x4d1   :  { %1199 = vmatpush3.bf16.msra.mxu0 %v1281_v18 }
 0x4d2   :  { %1204 = vmatprep.subr.bf16.mxu0 %v1365_v3 }
 0x4d4   :  { %1201 = vmatmul.mubr.msk.bf16.vlgmr.msra.gmra.mrb[8].mxu0 %vm179_vm1, %v1519_v26 }
 0x4d5   :  { %1208 = vmatprep.mubr.msk.bf16.mxu0 %vm1366_vm0, %v1365_v3  ;;  %1205 = vmatpush3.bf16.msra.mxu0 %v1282_v19 }
 0x4d6   :  { %1206 = vmatprep.subr.bf16.mxu0 %v1365_v3 }
 0x4d9   :  { %1207 = vmatpush3.bf16.msra.mxu0 %v1284_v21 }
 0x4da   :  { %1220 = vmatprep.subr.bf16.mxu0 %v1365_v3 }
 0x4dc   :  { %1209 = vmatmul.mubr.msk.bf16.vlgmr.msra.gmra.mrb[12].mxu0 %vm179_vm1, %v1487_v12 }
 0x4dd   :  { %1224 = vmatprep.mubr.msk.bf16.mxu0 %vm1366_vm0, %v1365_v3  ;;  %1221 = vmatpush3.bf16.msra.mxu0 %v1286_v57 }
 0x4de   :  { %1222 = vmatprep.subr.bf16.mxu0 %v1365_v3 }
 0x4e1   :  { %1223 = vmatpush3.bf16.msra.mxu0 %v1288_v59 }
 0x4e2   :  { %1236 = vmatprep.subr.bf16.mxu0 %v1365_v3 }
 0x4e4   :  { %1225 = vmatmul.mubr.msk.bf16.vlgmr.msra.gmra.mrb[16].mxu0 %vm179_vm1, %v734_v62 }
 0x4e5   :  { %1240 = vmatprep.mubr.msk.bf16.mxu0 %vm1366_vm0, %v1365_v3 }
 0x59f   :  { %v502_v23 = vpop.f32.mrb[4].mxu0 }
 0x5a0   :  { %v1194_v24 = vpop.f32.mrb[5].mxu0 }
 0x5a1   :  { %v505_v25 = vpop.f32.mrb[6].mxu0 }
 0x5a2   :  { %v1195_v26 = vpop.f32.mrb[7].mxu0 }
 0x5a7   :  { %v554_v28 = vpop.f32.mrb[8].mxu0 }
 0x5a8   :  { %v555_v29 = vadd.f32 %v554_v28, %v502_v23  ;;  %v1202_v30 = vpop.f32.mrb[9].mxu0 }
 0x5a9   :  { %v557_v31 = vpop.f32.mrb[10].mxu0  ;;  %v1291_v30 = vld [vmem:[%s1733_s8 + $0x8] sm:$0xff]  }
 0x5aa   :  { %v564_v32 = vadd.f32 %v1054_v27, %v555_v29  ;;  %v1203_v33 = vpop.f32.mrb[11].mxu0  ;;  %v1290_v29 = vld [vmem:[%s1733_s8] sm:$0xff]  }
 0x5ab   :  { %1237 = vmatpush3.bf16.msra.mxu0 %v1290_v29 }
 0x5ac   :  { %v565_v12 = vpack.c.bf16 %v564_v32, %v564_v32  ;;  %1238 = vmatprep.subr.bf16.mxu0 %v1365_v3 }
 0x5ae   :  { %1217 = vmatmul.mubr.msk.bf16.vlgmr.msra.gmra.mrb[12].mxu1 %vm179_vm1, %v565_v12 }
 0x5af   :  { %1232 = vmatprep.mubr.msk.bf16.mxu1 %vm1366_vm0, %v1365_v3  ;;  %v626_v34 = vpop.f32.mrb[12].mxu0  ;;  %1229 = vmatpush3.bf16.msra.mxu1 %v1287_v58 }
 0x5b0   :  { %v1210_v35 = vpop.f32.mrb[13].mxu0  ;;  %1230 = vmatprep.subr.bf16.mxu1 %v1365_v3  ;;  %1239 = vmatpush3.bf16.msra.mxu0 %v1291_v30  ;;  %v1083_v3 = vld [vmem:[%s1734_s9 + $0x4] ss:$0 sm:$0xff] }
 0x5b1   :  { %v629_v36 = vpop.f32.mrb[14].mxu0 }
 0x5b2   :  { %v1211_v37 = vpop.f32.mrb[15].mxu0 }
 0x5b3   :  { %1231 = vmatpush3.bf16.msra.mxu1 %v1289_v60 }
 0x5b7   :  { %v794_v5 = vpop.f32.mrb[16].mxu0 }
 0x5b8   :  { %v1226_v6 = vpop.f32.mrb[17].mxu0 }
 0x5b9   :  { %v797_v7 = vpop.f32.mrb[18].mxu0 }
 0x5ba   :  { %v1227_v8 = vpop.f32.mrb[19].mxu0 }
 0x681   :  { %v681_v39 = vpop.f32.mrb[12].mxu1 }
 0x682   :  { %v682_v40 = vadd.f32 %v681_v39, %v626_v34  ;;  %v1218_v41 = vpop.f32.mrb[13].mxu1 }
 0x683   :  { %v684_v42 = vpop.f32.mrb[14].mxu1 }
 0x684   :  { %v691_v43 = vadd.f32 %v1061_v38, %v682_v40  ;;  %v1219_v44 = vpop.f32.mrb[15].mxu1 }
 0x686   :  { %1296 = vtanh.f32 %v691_v43  ;;  %v1062_v47 = vmul.f32 -1.442695, %v691_v43 }
 0x688   :  { %1298 = vpow2.f32 %v1062_v47 }
 0x690   :  { %v1297_v45 = vpop.eup %1296 }
 0x691   :  { %706 = vrot.lane.b32.xlu1 %v1297_v45, %s1372_s19 }
 0x692   :  { %v1299_v48 = vpop.eup %1298 }
 0x693   :  { %v695_v49 = vadd.f32 1.0, %v1299_v48 }
 0x695   :  { %701 = vrot.lane.b32.xlu1 %v699_v46, %s1370_s5  ;;  %1300 = vrcp.f32 %v695_v49 }
 0x69f   :  { %v1301_v50 = vpop.eup %1300 }
 0x703   :  { %v707_v51 = vpop.permute.xlu1 %706 }
 0x704   :  { %v709_v52 = vmul.f32 %v1301_v50, %v707_v51 }
 0x706   :  { %711 = vrot.lane.b32.xlu1 %v709_v52, %s1370_s5 }
 0x707   :  { %v702_v53 = vpop.permute.xlu1 %701 }
 0x708   :  { %v704_v54 = vmul.f32 %v1301_v50, %v702_v53 }
 0x778   :  { %v712_v55 = vpop.permute.xlu1 %711 }
 0x779   :  { %v1631_v56 = vadd.f32 %v712_v55, %v704_v54 }
 0x77b   :  { %1302 = vtanh.f32 %v1631_v56 }
 0x785   :  { %v1303_v63 = vpop.eup %1302 }
 0x786   :  { %717 = vrot.lane.b32.xlu1 %v1303_v63, %s1372_s19 }
 0x7f8   :  { %v718_v0 = vpop.permute.xlu1 %717 }
 0x7f9   :  { %v720_v1 = vmul.f32 %v1301_v50, %v718_v0 }
 0x7fb   :  { %v731_v2 = vpack.c.bf16 %v720_v1, %v720_v1 }
 0x7fd   :  { %801 = vrot.lane.b32.xlu0 %v731_v2, %s1370_s5 }
 0x801   :  { %873 = vrot.lane.b32.xlu0 %v1080_v4, %s1370_s5 }
 0x86f   :  { %v802_v9 = vpop.permute.xlu0 %801 }
 0x870   :  { %1233 = vmatmul.mubr.msk.bf16.vlgmr.msra.gmra.mrb[16].mxu1 %vm179_vm1, %v802_v9 }
 0x873   :  { %v874_v25 = vpop.permute.xlu0 %873 }
 0x943   :  { %v852_v11 = vpop.f32.mrb[16].mxu1 }
 0x944   :  { %v853_v13 = vadd.f32 %v852_v11, %v794_v5  ;;  %v1234_v14 = vpop.f32.mrb[17].mxu1 }
 0x945   :  { %v855_v15 = vpop.f32.mrb[18].mxu1 }
 0x946   :  { %v862_v16 = vadd.f32 %v1078_v10, %v853_v13  ;;  %v1235_v17 = vpop.f32.mrb[19].mxu1 }
 0x948   :  { %1304 = vtanh.f32 %v862_v16  ;;  %v1079_v19 = vmul.f32 -1.442695, %v862_v16 }
 0x94a   :  { %1306 = vpow2.f32 %v1079_v19 }
 0x952   :  { %v1305_v18 = vpop.eup %1304 }
 0x953   :  { %878 = vrot.lane.b32.xlu1 %v1305_v18, %s1372_s19 }
 0x954   :  { %v1307_v20 = vpop.eup %1306 }
 0x955   :  { %v866_v21 = vadd.f32 1.0, %v1307_v20 }
 0x957   :  { %1308 = vrcp.f32 %v866_v21 }
 0x961   :  { %v1309_v22 = vpop.eup %1308 }
 0x962   :  { %v876_v26 = vmul.f32 %v1309_v22, %v874_v25 }
 0x9c5   :  { %v879_v23 = vpop.permute.xlu1 %878 }
 0x9c6   :  { %v881_v24 = vmul.f32 %v1309_v22, %v879_v23 }
 0x9c8   :  { %883 = vrot.lane.b32.xlu1 %v881_v24, %s1370_s5 }
 0xa3a   :  { %v884_v27 = vpop.permute.xlu1 %883 }
 0xa3b   :  { %v886_v28 = vadd.f32 %v884_v27, %v876_v26 }
 0xa3d   :  { %1310 = vtanh.f32 %v886_v28 }
 0xa47   :  { %v1311_v31 = vpop.eup %1310 }
 0xa48   :  { %889 = vrot.lane.b32.xlu0 %v1311_v31, %s1372_s19 }
 0xaba   :  { %v890_v32 = vpop.permute.xlu0 %889 }
 0xabb   :  { %v892_v33 = vmul.f32 %v1309_v22, %v890_v32 }
 0xabd   :  { %v905_v12 = vpack.c.bf16 %v892_v33, %v892_v33 }
 0xabf   :  { %916 = vrot.lane.b32.xlu1 %v905_v12, %s1370_s5 }
 0xac3   :  { %727 = vrot.lane.b32.xlu1 %v1631_v56, %s1368_s29 }
 0xb31   :  { %v917_v34 = vpop.permute.xlu1 %916 }
 0xb32   :  { %1241 = vmatmul.mubr.msk.bf16.vlgmr.msra.gmra.mrb[20].mxu0 %vm179_vm1, %v917_v34 }
 0xb35   :  { %v728_v35 = vpop.permute.xlu1 %727 }
 0xb36   :  { %730 = vst.msk [vmem:[%s1737_s12] sm:$0xff] %vm179_vm1, %v728_v35 }
 0xc05   :  { %v967_v36 = vpop.f32.mrb[20].mxu0 }
 0xc06   :  { %v968_v37 = vadd.f32 %v1083_v3, %v967_v36  ;;  %v1242_v38 = vpop.f32.mrb[21].mxu0 }
 0xc07   :  { %v970_v39 = vpop.f32.mrb[22].mxu0 }
 0xc08   :  { %973 = vmax.xlane.f32.xlu0 %v968_v37  ;;  %v1243_v40 = vpop.f32.mrb[23].mxu0 }
 0xc1e   :  { %722 = vrot.lane.b32.xlu0 %v720_v1, %s1370_s5 }
 0xc22   :  { %894 = vrot.lane.b32.xlu0 %v892_v33, %s1370_s5  ;;  %s1375_s5 = smov [#allocation4]  }
 0xc23   :  { %s1004_s23 = sshll.u32 %s1375_s5, 4  ;;  %s1005_s23 = int_to_ptr.vmem [resolvable:$true] %s1004_s23 }
 0xc24   :  { %s1316_s24 = scalar_lea.vmem %s1005_s23, 128  ;;  %p1321_p1 = scmp.lt.s32.totalorder %s1005_s23, %s1005_s23 }
 0xc25   :  { %p1317_p0 = scmp.ne.s32.totalorder %s1005_s23, %s1316_s24  ;;  %p1322_p2 = scmp.lt.s32.totalorder %s1316_s24, %s1316_s24 }
 0xc27   :  { %p1323_p3 = por %p1322_p2, %p1321_p1 }
 0xc29   :  { %p1324_p4 = pnand %p1323_p3, %p1317_p0 }
 0xc95   :  { %v974_v41 = vpop.xlane.xlu0 %973 }
 0xc96   :  { %v975_v42 = vsub.f32 %v968_v37, %v974_v41 }
 0xc98   :  { %v976_v43 = vmul.f32 1.442695, %v975_v42 }
 0xc99   :  { %v723_v44 = vpop.permute.xlu0 %722 }
 0xc9a   :  { %1312 = vpow2.f32 %v976_v43  ;;  %725 = vst.msk [vmem:[%s1736_s11] sm:$0xff] %vm179_vm1, %v723_v44 }
 0xc9d   :  { %v895_v45 = vpop.permute.xlu0 %894 }
 0xc9e   :  { %1081 = vst.msk [vmem:[%s1736_s11 + $0x8] sm:$0xff] %vm179_vm1, %v895_v45 }
 0xca4   :  { %v1313_v46 = vpop.eup %1312 }
 0xca5   :  { %978 = vadd.xlane.f32.xlu1 %v1313_v46 }
 0xcb6   :  { %900 = vrot.lane.b32.xlu1 %v886_v28, %s1368_s29 }
 0xcb7   :  { %1327 = shalt.err (!%p1324_p4)
}
 0xcb8   :  { %s1328_s27 = scalar_lea.hbm %s1738_s13, 128 }
 0xcb9   :  { %p1329_p5 = scmp.ne.s32.totalorder %s1738_s13, %s1328_s27  ;;  %p1332_p6 = scmp.lt.u32.totalorder %s1328_s27, %s1738_s13 }
 0xcbb   :  { %p1334_p7 = pnand %p1332_p6, %p1329_p5 }
 0xcbd   :  { %1337 = shalt.err (!%p1334_p7)
}
 0xcbe   :  { %1007 = dma.vmem_to_hbm [thread:$0]  %s1005_s23, 128, %s1738_s13, [#allocation5]  }
 0xcbf   :  { %s1376_s14 = smov [#allocation2]  }
 0xcc0   :  { %s990_s15 = sshll.u32 %s1376_s14, 4  ;;  %s991_s15 = int_to_ptr.vmem [resolvable:$true] %s990_s15 }
 0xcc1   :  { %s1338_s3 = scalar_lea.vmem %s991_s15, 128  ;;  %p1343_p9 = scmp.lt.s32.totalorder %s991_s15, %s991_s15 }
 0xcc2   :  { %p1339_p8 = scmp.ne.s32.totalorder %s991_s15, %s1338_s3  ;;  %p1344_p10 = scmp.lt.s32.totalorder %s1338_s3, %s1338_s3 }
 0xcc4   :  { %p1345_p11 = por %p1344_p10, %p1343_p9 }
 0xcc6   :  { %p1346_p12 = pnand %p1345_p11, %p1339_p8 }
 0xd32   :  { %v979_v47 = vpop.xlane.xlu1 %978 }
 0xd33   :  { %1314 = vlog2.f32 %v979_v47 }
 0xd36   :  { %v901_v48 = vpop.permute.xlu1 %900 }
 0xd37   :  { %1082 = vst.msk [vmem:[%s1737_s12 + $0x8] sm:$0xff] %vm179_vm1, %v901_v48 }
 0xd3d   :  { %v1315_v49 = vpop.eup %1314 }
 0xd3e   :  { %v981_v50 = vmul.f32 0.6931472, %v1315_v49 }
 0xd40   :  { %v982_v51 = vsub.f32 %v975_v42, %v981_v50 }
 0xd42   :  { %983 = vst [vmem:[#allocation2] sm:$0xff] %v982_v51 }
 0xd43   :  { %1349 = shalt.err (!%p1346_p12)
}
 0xd44   :  { %s1350_s16 = scalar_lea.hbm %s1735_s10, 128 }
 0xd45   :  { %p1351_p13 = scmp.ne.s32.totalorder %s1735_s10, %s1350_s16  ;;  %p1354_p0 = scmp.lt.u32.totalorder %s1350_s16, %s1735_s10 }
 0xd47   :  { %p1356_p1 = pnand %p1354_p0, %p1351_p13 }
 0xd49   :  { %1359 = shalt.err (!%p1356_p1)
}
 0xd4a   :  { %993 = dma.vmem_to_hbm [thread:$0]  %s991_s15, 128, %s1735_s10, [#allocation3]  }
 0xd4b   :  { %1360 = dma.done.wait [#allocation3], 128  }
 0xd4c   :  { %1361 = vsyncadd [#allocation3], 4294967168 }
 0xd4d   :  { %1362 = dma.done.wait [#allocation5], 128  }
 0xd4e   :  { %1363 = vsyncadd [#allocation5], 4294967168 }
 0xd4f   :  { %1018 = vsyncpa [#allocation3], 1 }
 0xd50   :  { %1019 = vsyncpa [#allocation5], 1 }

</bundles_post_ra>
